<compile_context>
chip_gen: v5e
topology: v5e:2x2
jax: 0.10.0
libtpu: 0.0.40
codegen_flags: <defaults>
</compile_context>

<pallas_src>
import functools

import jax
import jax.numpy as jnp
from jax.experimental import pallas as pl
from jax.experimental.pallas import tpu as pltpu


def _round_up(n, m):
    return ((n + m - 1) // m) * m


def _leaky_relu(x, slope=0.2):
    return jnp.where(x >= 0, x, slope * x)


def weight_mlp_kernel(x_ref, w1_ref, b1_ref, w2_ref, b2_ref, w3_ref, b3_ref, o_ref):
    # x tile: [TB, in] bf16; all matmuls accumulate in f32 on the MXU,
    # LeakyReLU math is done in f32 on the VPU.
    x = x_ref[...]

    h1 = jnp.dot(x, w1_ref[...], preferred_element_type=jnp.float32) + b1_ref[...]
    h1 = _leaky_relu(h1)

    h2 = jnp.dot(h1.astype(jnp.bfloat16), w2_ref[...],
                 preferred_element_type=jnp.float32) + b2_ref[...]
    h2 = _leaky_relu(h2)

    out = jnp.dot(h2.astype(jnp.bfloat16), w3_ref[...],
                  preferred_element_type=jnp.float32) + b3_ref[...]
    o_ref[...] = out.astype(o_ref.dtype)


@functools.partial(jax.jit, static_argnames=("tb",))
def weight_mlp(x, params, tb=1024):
    """x: [B, in_channel] float32.  params: dict of (w1,b1,w2,b2,w3,b3)."""
    w1, b1, w2, b2, w3, b3 = (params[k] for k in ("w1", "b1", "w2", "b2", "w3", "b3"))
    B, in_channel = x.shape
    h1_dim = w1.shape[1]          # 128
    h2_dim = w2.shape[1]          # 32
    num_classes = w3.shape[1]
    n_pad = _round_up(num_classes, 128)   # lane-dense output width

    # Zero-pad final layer to a lane-dense 128-multiple output; slice after the call.
    w3p = jnp.pad(w3, ((0, 0), (0, n_pad - num_classes)))
    b3p = jnp.pad(b3, ((0, 0), (0, n_pad - num_classes)))

    # Batch tile: cap at `tb`, keep 8-sublane alignment, pad B up to a tile multiple.
    TB = min(tb, _round_up(B, 8))
    b_pad = _round_up(B, TB)
    xp = x if b_pad == B else jnp.pad(x, ((0, b_pad - B), (0, 0)))

    # bf16 streaming data / weights, f32 biases (added post-accumulation).
    xp = xp.astype(jnp.bfloat16)
    w1b = w1.astype(jnp.bfloat16)
    w2b = w2.astype(jnp.bfloat16)
    w3b = w3p.astype(jnp.bfloat16)
    b1f = b1.astype(jnp.float32)
    b2f = b2.astype(jnp.float32)
    b3f = b3p.astype(jnp.float32)

    grid = (b_pad // TB,)

    flops = 2 * b_pad * (in_channel * h1_dim + h1_dim * h2_dim + h2_dim * n_pad)
    bytes_accessed = (
        xp.size * 2 + b_pad * n_pad * 4
        + (w1b.size + w2b.size + w3b.size) * 2
        + (b1f.size + b2f.size + b3f.size) * 4
    )
    cost = pl.CostEstimate(flops=flops, transcendentals=0,
                           bytes_accessed=bytes_accessed)

    out = pl.pallas_call(
        weight_mlp_kernel,
        out_shape=jax.ShapeDtypeStruct((b_pad, n_pad), jnp.float32),
        grid=grid,
        in_specs=[
            pl.BlockSpec((TB, in_channel), lambda i: (i, 0)),   # x: streamed per tile
            pl.BlockSpec((in_channel, h1_dim), lambda i: (0, 0)),  # weights resident
            pl.BlockSpec((1, h1_dim), lambda i: (0, 0)),
            pl.BlockSpec((h1_dim, h2_dim), lambda i: (0, 0)),
            pl.BlockSpec((1, h2_dim), lambda i: (0, 0)),
            pl.BlockSpec((h2_dim, n_pad), lambda i: (0, 0)),
            pl.BlockSpec((1, n_pad), lambda i: (0, 0)),
        ],
        out_specs=pl.BlockSpec((TB, n_pad), lambda i: (i, 0)),
        compiler_params=pltpu.CompilerParams(
            dimension_semantics=("parallel",)),
        cost_estimate=cost,
    )(xp, w1b, b1f, w2b, b2f, w3b, b3f)

    return out[:B, :num_classes]


def init_params(key, in_channel, num_classes=2):
    """Deterministic synthetic init mimicking nn.Linear's uniform(-1/sqrt(fan_in), +)."""
    dims = [(in_channel, 128), (128, 32), (32, num_classes)]
    params = {}
    for i, (fan_in, fan_out) in enumerate(dims, start=1):
        key, kw, kb = jax.random.split(key, 3)
        bound = 1.0 / jnp.sqrt(float(fan_in))
        # stored as [in, out] (already transposed relative to PyTorch's [out, in])
        params[f"w{i}"] = jax.random.uniform(
            kw, (fan_in, fan_out), jnp.float32, -bound, bound)
        params[f"b{i}"] = jax.random.uniform(
            kb, (1, fan_out), jnp.float32, -bound, bound)
    return params


def reference_mlp(x, params):
    h = x @ params["w1"] + params["b1"]
    h = jnp.where(h >= 0, h, 0.2 * h)
    h = h @ params["w2"] + params["b2"]
    h = jnp.where(h >= 0, h, 0.2 * h)
    return h @ params["w3"] + params["b3"]


if __name__ == "__main__":
    key = jax.random.PRNGKey(0)
    in_channel, num_classes, batch = 32, 2, 8

    kx, kp = jax.random.split(key)
    x = jax.random.normal(kx, (batch, in_channel), jnp.float32)
    params = init_params(kp, in_channel, num_classes)

    out = weight_mlp(x, params)
    out = jax.block_until_ready(out)

    ref = reference_mlp(x, params)
    assert out.shape == (batch, num_classes)
    # bf16 inputs/weights with f32 accumulation -> relaxed tolerance vs f32 reference.
    assert jnp.allclose(out, ref, atol=5e-2, rtol=5e-2), (out, ref)

    print("KERNEL_OK")
</pallas_src>

<mosaic_0001>
module attributes {stable_mosaic.version = 11 : i64} {
  func.func @weight_mlp_kernel(%arg0: i32, %arg1: memref<8x32xbf16, #tpu.memory_space<vmem>>, %arg2: memref<32x128xbf16, #tpu.memory_space<vmem>>, %arg3: memref<1x128xf32, #tpu.memory_space<vmem>>, %arg4: memref<128x32xbf16, #tpu.memory_space<vmem>>, %arg5: memref<1x32xf32, #tpu.memory_space<vmem>>, %arg6: memref<32x128xbf16, #tpu.memory_space<vmem>>, %arg7: memref<1x128xf32, #tpu.memory_space<vmem>>, %arg8: memref<8x128xf32, #tpu.memory_space<vmem>>) attributes {dimension_semantics = [#tpu.dimension_semantics<parallel>], iteration_bounds = array<i64: 1>, scalar_prefetch = 0 : i64, scratch_operands = 0 : i64, tpu.core_type = #tpu.core_type<tc>, window_params = [{transform_indices = @transform_0, window_bounds = array<i64: 8, 32>}, {pipeline_mode = #tpu.pipeline_mode<synchronous>, transform_indices = @transform_1, window_bounds = array<i64: 32, 128>}, {pipeline_mode = #tpu.pipeline_mode<synchronous>, transform_indices = @transform_2, window_bounds = array<i64: 1, 128>}, {pipeline_mode = #tpu.pipeline_mode<synchronous>, transform_indices = @transform_3, window_bounds = array<i64: 128, 32>}, {pipeline_mode = #tpu.pipeline_mode<synchronous>, transform_indices = @transform_4, window_bounds = array<i64: 1, 32>}, {pipeline_mode = #tpu.pipeline_mode<synchronous>, transform_indices = @transform_5, window_bounds = array<i64: 32, 128>}, {pipeline_mode = #tpu.pipeline_mode<synchronous>, transform_indices = @transform_6, window_bounds = array<i64: 1, 128>}, {transform_indices = @transform_7, window_bounds = array<i64: 8, 128>}]} {
    %c0 = arith.constant 0 : index
    %c0_0 = arith.constant 0 : index
    %0 = vector.load %arg1[%c0, %c0_0] : memref<8x32xbf16, #tpu.memory_space<vmem>>, vector<8x32xbf16>
    %c0_1 = arith.constant 0 : index
    %c0_2 = arith.constant 0 : index
    %1 = vector.load %arg2[%c0_1, %c0_2] : memref<32x128xbf16, #tpu.memory_space<vmem>>, vector<32x128xbf16>
    %cst = arith.constant dense<0.000000e+00> : vector<8x128xf32>
    %2 = tpu.matmul %0, %1, %cst {dimension_numbers = #tpu.dot_dimension_numbers<[1], [0], [0], [1], [0, 0, 1, 1], [], []>} : vector<8x32xbf16>, vector<32x128xbf16>, vector<8x128xf32> -> vector<8x128xf32>
    %c0_3 = arith.constant 0 : index
    %c0_4 = arith.constant 0 : index
    %3 = vector.load %arg3[%c0_3, %c0_4] : memref<1x128xf32, #tpu.memory_space<vmem>>, vector<1x128xf32>
    %4 = vector.broadcast %3 : vector<1x128xf32> to vector<8x128xf32>
    %5 = arith.addf %2, %4 : vector<8x128xf32>
    %cst_5 = arith.constant 0.000000e+00 : f32
    %6 = vector.broadcast %cst_5 : f32 to vector<8x128xf32>
    %7 = arith.cmpf oge, %5, %6 : vector<8x128xf32>
    %cst_6 = arith.constant 2.000000e-01 : f32
    %8 = vector.broadcast %cst_6 : f32 to vector<8x128xf32>
    %9 = arith.mulf %8, %5 : vector<8x128xf32>
    %10 = arith.select %7, %5, %9 : vector<8x128xi1>, vector<8x128xf32>
    %11 = arith.truncf %10 : vector<8x128xf32> to vector<8x128xbf16>
    %c0_7 = arith.constant 0 : index
    %c0_8 = arith.constant 0 : index
    %12 = vector.load %arg4[%c0_7, %c0_8] : memref<128x32xbf16, #tpu.memory_space<vmem>>, vector<128x32xbf16>
    %cst_9 = arith.constant dense<0.000000e+00> : vector<8x32xf32>
    %13 = tpu.matmul %11, %12, %cst_9 {dimension_numbers = #tpu.dot_dimension_numbers<[1], [0], [0], [1], [0, 0, 1, 1], [], []>} : vector<8x128xbf16>, vector<128x32xbf16>, vector<8x32xf32> -> vector<8x32xf32>
    %c0_10 = arith.constant 0 : index
    %c0_11 = arith.constant 0 : index
    %14 = vector.load %arg5[%c0_10, %c0_11] : memref<1x32xf32, #tpu.memory_space<vmem>>, vector<1x32xf32>
    %15 = vector.broadcast %14 : vector<1x32xf32> to vector<8x32xf32>
    %16 = arith.addf %13, %15 : vector<8x32xf32>
    %cst_12 = arith.constant 0.000000e+00 : f32
    %17 = vector.broadcast %cst_12 : f32 to vector<8x32xf32>
    %18 = arith.cmpf oge, %16, %17 : vector<8x32xf32>
    %cst_13 = arith.constant 2.000000e-01 : f32
    %19 = vector.broadcast %cst_13 : f32 to vector<8x32xf32>
    %20 = arith.mulf %19, %16 : vector<8x32xf32>
    %21 = arith.select %18, %16, %20 : vector<8x32xi1>, vector<8x32xf32>
    %22 = arith.truncf %21 : vector<8x32xf32> to vector<8x32xbf16>
    %c0_14 = arith.constant 0 : index
    %c0_15 = arith.constant 0 : index
    %23 = vector.load %arg6[%c0_14, %c0_15] : memref<32x128xbf16, #tpu.memory_space<vmem>>, vector<32x128xbf16>
    %cst_16 = arith.constant dense<0.000000e+00> : vector<8x128xf32>
    %24 = tpu.matmul %22, %23, %cst_16 {dimension_numbers = #tpu.dot_dimension_numbers<[1], [0], [0], [1], [0, 0, 1, 1], [], []>} : vector<8x32xbf16>, vector<32x128xbf16>, vector<8x128xf32> -> vector<8x128xf32>
    %c0_17 = arith.constant 0 : index
    %c0_18 = arith.constant 0 : index
    %25 = vector.load %arg7[%c0_17, %c0_18] : memref<1x128xf32, #tpu.memory_space<vmem>>, vector<1x128xf32>
    %26 = vector.broadcast %25 : vector<1x128xf32> to vector<8x128xf32>
    %27 = arith.addf %24, %26 : vector<8x128xf32>
    %c0_19 = arith.constant 0 : index
    %c0_20 = arith.constant 0 : index
    %28 = vector.load %arg8[%c0_19, %c0_20] : memref<8x128xf32, #tpu.memory_space<vmem>>, vector<8x128xf32>
    tpu.vector_store %arg8[%c0_19, %c0_20], %27 {strides = array<i32>} : memref<8x128xf32, #tpu.memory_space<vmem>>, vector<8x128xf32>,
    return
  }
  func.func @transform_0(%arg0: i32) -> (i32, i32) {
    %c0_i32 = arith.constant 0 : i32
    %c0_i32_0 = arith.constant 0 : i32
    return %arg0, %c0_i32 : i32, i32
  }
  func.func @transform_1(%arg0: i32) -> (i32, i32) {
    %c0_i32 = arith.constant 0 : i32
    %c0_i32_0 = arith.constant 0 : i32
    %c0_i32_1 = arith.constant 0 : i32
    return %c0_i32, %c0_i32_0 : i32, i32
  }
  func.func @transform_2(%arg0: i32) -> (i32, i32) {
    %c0_i32 = arith.constant 0 : i32
    %c0_i32_0 = arith.constant 0 : i32
    %c0_i32_1 = arith.constant 0 : i32
    return %c0_i32, %c0_i32_0 : i32, i32
  }
  func.func @transform_3(%arg0: i32) -> (i32, i32) {
    %c0_i32 = arith.constant 0 : i32
    %c0_i32_0 = arith.constant 0 : i32
    %c0_i32_1 = arith.constant 0 : i32
    return %c0_i32, %c0_i32_0 : i32, i32
  }
  func.func @transform_4(%arg0: i32) -> (i32, i32) {
    %c0_i32 = arith.constant 0 : i32
    %c0_i32_0 = arith.constant 0 : i32
    %c0_i32_1 = arith.constant 0 : i32
    return %c0_i32, %c0_i32_0 : i32, i32
  }
  func.func @transform_5(%arg0: i32) -> (i32, i32) {
    %c0_i32 = arith.constant 0 : i32
    %c0_i32_0 = arith.constant 0 : i32
    %c0_i32_1 = arith.constant 0 : i32
    return %c0_i32, %c0_i32_0 : i32, i32
  }
  func.func @transform_6(%arg0: i32) -> (i32, i32) {
    %c0_i32 = arith.constant 0 : i32
    %c0_i32_0 = arith.constant 0 : i32
    %c0_i32_1 = arith.constant 0 : i32
    return %c0_i32, %c0_i32_0 : i32, i32
  }
  func.func @transform_7(%arg0: i32) -> (i32, i32) {
    %c0_i32 = arith.constant 0 : i32
    %c0_i32_0 = arith.constant 0 : i32
    return %arg0, %c0_i32 : i32, i32
  }
}

</mosaic_0001>

<bundles_post_ra>
// kernel: weight_mlp.1
= control target key start
LH: loop header
LB: loop body
LE: loop exit
PB: predicated region body
PF: predicated region fallthrough
CT: control target
= control target key end

     0   :  { %vm48_vm0 = vcmask 261120   ;;  %s353_s1 = inlined_call_operand.vmem [shape: bf16[32,128], index: 1, kind: input, shape index: {}]   ;;  %s354_s3 = inlined_call_operand.vmem [shape: bf16[128,32], index: 3, kind: input, shape index: {}]   ;;  %s355_s2 = inlined_call_operand.vmem [shape: f32[1,128], index: 2, kind: input, shape index: {}]   ;;  %s356_s0 = inlined_call_operand.vmem [shape: bf16[8,32], index: 0, kind: input, shape index: {}]   ;;  %s357_s4 = inlined_call_operand.vmem [shape: f32[1,32], index: 4, kind: input, shape index: {}]   ;;  %s358_s6 = inlined_call_operand.vmem [shape: f32[1,128], index: 6, kind: input, shape index: {}]   ;;  %s359_s5 = inlined_call_operand.vmem [shape: bf16[32,128], index: 5, kind: input, shape index: {}]   ;;  %s360_s7 = inlined_call_operand.vmem [shape: f32[8,128], index: 7, kind: output, shape index: {}]  }
   0x1   :  { %v246_v0 = vld [vmem:[%s353_s1 + $0x8] sm:$0xff]  ;;  %v254_v1 = vld [vmem:[%s354_s3 + $0x38] sm:$0xff]  ;;  %v245_v2 = vld [vmem:[%s353_s1] sm:$0xff] }
   0x2   :  { %58 = vmatpush.bf16.msra.mxu0 %v246_v0  ;;  %137 = vmatpush.bf16.msra.mxu1 %v254_v1  ;;  %v253_v3 = vld [vmem:[%s354_s3 + $0x30] sm:$0xff]  ;;  %v27_v4 = vld [vmem:[%s356_s0] sm:$0xf]  ;;  %v252_v5 = vld [vmem:[%s354_s3 + $0x28] sm:$0xff] }
   0x3   :  { %v251_v6 = vld [vmem:[%s354_s3 + $0x20] sm:$0xff]  ;;  %v250_v7 = vld [vmem:[%s354_s3 + $0x18] sm:$0xff]  ;;  %v249_v8 = vld [vmem:[%s354_s3 + $0x10] sm:$0xff] }
   0x4   :  { %v248_v9 = vld [vmem:[%s354_s3 + $0x8] sm:$0xff]  ;;  %v247_v10 = vld [vmem:[%s354_s3] sm:$0xff] }
   0x5   :  { %v257_v11 = vld [vmem:[%s355_s2] ss:$0 sm:$0xff]  ;;  %v256_v18 = vld [vmem:[%s359_s5 + $0x8] sm:$0xff] }
   0x6   :  { %59 = vmatpush.bf16.msra.mxu0 %v245_v2  ;;  %138 = vmatpush.bf16.msra.mxu1 %v253_v3  ;;  %v255_v19 = vld [vmem:[%s359_s5] sm:$0xff] }
   0x7   :  { %183 = vmatpush.bf16.msra.mxu2 %v256_v18  ;;  %v258_v20 = vld [vmem:[%s357_s4] ss:$0 sm:$0xff] }
   0x8   :  { %v259_v27 = vld [vmem:[%s358_s6] ss:$0 sm:$0xff] }
   0x9   :  { %203 = vmatmul.msk.bf16.vlgmr.msra.gmra.mxu0 %vm48_vm0, %v27_v4 }
   0xa   :  { %139 = vmatpush.bf16.msra.mxu1 %v252_v5 }
   0xb   :  { %184 = vmatpush.bf16.msra.mxu2 %v255_v19 }
   0xe   :  { %140 = vmatpush.bf16.msra.mxu1 %v251_v6 }
  0x12   :  { %141 = vmatpush.bf16.msra.mxu1 %v250_v7 }
  0x16   :  { %142 = vmatpush.bf16.msra.mxu1 %v249_v8 }
  0x1a   :  { %143 = vmatpush.bf16.msra.mxu1 %v248_v9 }
  0x1e   :  { %144 = vmatpush.bf16.msra.mxu1 %v247_v10 }
  0x86   :  { %v61_v12 = vpop.f32.mrf.mxu0 }
  0x87   :  { %v62_v13 = vadd.f32 %v257_v11, %v61_v12 }
  0x89   :  { %v66_v14 = vmul.f32 0.2, %v62_v13  ;;  %vm65_vm1 = vcmp.ge.f32.partialorder %v62_v13, 0.0 }
  0x8b   :  { %v67_v15 = vsel %vm65_vm1, %v62_v13, %v66_v14 }
  0x8c   :  { %v68_v16 = vpack.c.bf16 %v67_v15, %v67_v15 }
  0x8e   :  { %v63_v17 = vpop.f32.mrf.mxu0  ;;  %145 = vmatmul.bf16.vlgmr.msra.gmra.mxu1 %v68_v16 }
 0x10b   :  { %v146_v21 = vpop.f32.mrf.mxu1 }
 0x10c   :  { %v147_v22 = vadd.f32 %v258_v20, %v146_v21 }
 0x10e   :  { %vm150_vm2 = vcmp.ge.f32.partialorder %v147_v22, 0.0  ;;  %v151_v23 = vmul.f32 0.2, %v147_v22 }
 0x110   :  { %v152_v24 = vsel %vm150_vm2, %v147_v22, %v151_v23 }
 0x111   :  { %v153_v25 = vpack.c.bf16 %v152_v24, %v152_v24 }
 0x113   :  { %v148_v26 = vpop.f32.mrf.mxu1  ;;  %244 = vmatmul.msk.bf16.vlgmr.msra.gmra.mxu2 %vm48_vm0, %v153_v25 }
 0x196   :  { %v186_v28 = vpop.f32.mrf.mxu2 }
 0x197   :  { %v187_v29 = vadd.f32 %v259_v27, %v186_v28 }
 0x199   :  { %190 = vst [vmem:[%s360_s7] sm:$0xff] %v187_v29 }
 0x19e   :  { %v188_v30 = vpop.f32.mrf.mxu2 }

</bundles_post_ra>
